<compile_context>
chip_gen: v6e
topology: v6e:2x2x1
jax: 0.10.0
libtpu: 0.0.40
codegen_flags: <defaults>
</compile_context>

<pallas_src>
import functools

import numpy as np
import jax
import jax.numpy as jnp
from jax.experimental import pallas as pl
from jax.experimental.pallas import tpu as pltpu

EPS = 1e-5  # PyTorch GroupNorm default eps
_HI = jax.lax.Precision.HIGHEST


def _group_count(groups, channels):
    g = min(groups, channels) if channels > 0 else 1
    while g > 1 and channels % g != 0:
        g -= 1
    return g


def _group_avg_matrix(C, G, L):
    """P[i, j] = 1/(L*cpg) if channels i, j are in the same GroupNorm group."""
    cpg = C // G
    c = np.arange(C)
    same = (c[:, None] // cpg) == (c[None, :] // cpg)
    return jnp.asarray(same.astype(np.float32) / float(L * cpg))


def _pick_b_tile(B, max_b_tile):
    """Largest divisor of B that still leaves >=2 grid steps when B >= 2."""
    if B < 2:
        return max(B, 1)
    cap = min(max_b_tile, max(1, B // 2))
    for t in range(min(cap, B), 0, -1):
        if B % t == 0:
            return t
    return 1


def _residual_block_kernel(
    x_ref, bias1_ref,
    g1_ref, b1_ref, p1_ref, w1_ref,
    g2_ref, b2_ref, p2_ref, w2_ref, cb2_ref,
    *rest, b_tile, has_skip, mxu_dtype, act_dtype,
):
    if has_skip:
        wskip_ref, bskip_ref, o_ref = rest
    else:
        (o_ref,) = rest

    f32 = jnp.float32
    L = x_ref.shape[-1]

    # Edge masks for the k=3 taps: built ONCE, shared by both convs and all
    # samples in this block (JAX does not CSE broadcast_in_dim).
    col = jax.lax.broadcasted_iota(jnp.int32, (1, L), 1)
    not_first = col != 0          # h_prev is zero-padded at l == 0
    not_last = col != L - 1       # h_next is zero-padded at l == L-1

    def silu(v):
        v = v.astype(act_dtype)
        return v * jax.nn.sigmoid(v)

    def conv3(h, w_ref):
        # Conv1d(k=3, pad=1) as one matmul with contraction K = 3*C:
        # w_ref[o, k*C + c] == W_torch[o, c, k].
        # Cast BEFORE the tap rolls/concat so the repack moves half the bytes.
        hq = h.astype(mxu_dtype)
        h_prev = jnp.where(not_first, pltpu.roll(hq, shift=1, axis=1), 0.0)
        h_next = jnp.where(not_last, pltpu.roll(hq, shift=L - 1, axis=1), 0.0)
        stacked = jnp.concatenate([h_prev, hq, h_next], axis=0)    # (3C, L)
        return jnp.dot(w_ref[...], stacked, preferred_element_type=f32)

    def group_norm(h, p_ref, gamma_ref, beta_ref):
        # Reduce over L (lanes) -> per-channel sums, then ONE (C,C) matmul
        # with the precomputed group-average matrix per statistic.
        sum_c = jnp.sum(h, axis=1, keepdims=True)                   # (C, 1)
        mean_c = jnp.dot(p_ref[...], sum_c, preferred_element_type=f32)
        d = h - mean_c                                              # reused below
        ss_c = jnp.sum(d * d, axis=1, keepdims=True)                # (C, 1)
        var_c = jnp.dot(p_ref[...], ss_c, preferred_element_type=f32)
        inv = jax.lax.rsqrt(var_c + EPS)
        return d * inv * gamma_ref[...] + beta_ref[...]

    for i in range(b_tile):                     # static unroll over samples
        x = x_ref[i].astype(f32)                # (C_in, L)

        # norm1 -> SiLU -> conv1 (+ conv1 bias + FiLM biases, precomputed)
        h = group_norm(x, p1_ref, g1_ref, b1_ref)
        h = conv3(silu(h), w1_ref) + bias1_ref[i]

        # norm2 -> SiLU -> dropout(identity) -> conv2
        h = group_norm(h, p2_ref, g2_ref, b2_ref)
        # TODO(synk): nn.Dropout is identity at inference; training-mode
        # stochastic dropout (pltpu.prng_seed / prng_random_bits) not done.
        h = conv3(silu(h), w2_ref) + cb2_ref[...]

        # Skip connection computed last to keep the residual live range short.
        if has_skip:
            residual = jnp.dot(wskip_ref[...], x.astype(mxu_dtype),
                               preferred_element_type=f32) + bskip_ref[...]
        else:
            residual = x                        # nn.Identity: no matmul at all
        o_ref[i] = (h + residual).astype(o_ref.dtype)


def residual_block_1d(x, time_emb, cond_emb, params, groups=8,
                      mxu_dtype=jnp.bfloat16,
                      act_dtype=jnp.float32,     # pass bf16 on v6e/v7x to relieve EUP; keep f32 on v5e
                      out_dtype=None,
                      max_b_tile=8,
                      vmem_limit_bytes=48 * 1024 * 1024):
    """x: (B, C_in, L) NCL like PyTorch Conv1d. Returns (B, C_out, L)."""
    f32 = jnp.float32
    B, C_in, L = x.shape
    C_out = params["conv1_w"].shape[0]
    has_skip = C_in != C_out
    out_dtype = x.dtype if out_dtype is None else out_dtype

    G_in = _group_count(groups, C_in)
    G_out = _group_count(groups, C_out)

    # FiLM projections hoisted out of the kernel (M=1 matmuls are pure MXU
    # padding); conv1's bias folded in too -> one (B, C_out, 1) bias.
    bias1 = (
        jnp.dot(jax.nn.silu(time_emb.astype(f32)),
                params["time_w"].T.astype(f32), precision=_HI)
        + params["time_b"].astype(f32)
        + jnp.dot(jax.nn.silu(cond_emb.astype(f32)),
                  params["cond_w"].T.astype(f32), precision=_HI)
        + params["cond_b"].astype(f32)
        + params["conv1_b"].astype(f32)
    )[:, :, None]                                             # (B, C_out, 1)

    # Group-average matrices (collapse the one-hot matmul chain).
    p1 = _group_avg_matrix(C_in, G_in, L)                     # (C_in, C_in)
    p2 = _group_avg_matrix(C_out, G_out, L)                   # (C_out, C_out)

    g1 = params["norm1_g"].reshape(C_in, 1).astype(f32)
    b1 = params["norm1_b"].reshape(C_in, 1).astype(f32)
    g2 = params["norm2_g"].reshape(C_out, 1).astype(f32)
    b2 = params["norm2_b"].reshape(C_out, 1).astype(f32)
    # Conv weights pre-fused for a single K=3*C matmul: col k*C + c == W[o, c, k].
    w1 = jnp.transpose(params["conv1_w"], (0, 2, 1)).reshape(C_out, 3 * C_in).astype(mxu_dtype)
    w2 = jnp.transpose(params["conv2_w"], (0, 2, 1)).reshape(C_out, 3 * C_out).astype(mxu_dtype)
    cb2 = params["conv2_b"].reshape(C_out, 1).astype(f32)

    consts = [g1, b1, p1, w1, g2, b2, p2, w2, cb2]
    if has_skip:
        wskip = params["skip_w"][:, :, 0].astype(mxu_dtype)   # (C_out, C_in)
        bskip = params["skip_b"].reshape(C_out, 1).astype(f32)
        consts += [wskip, bskip]

    # B_tile samples per grid step; keep >=2 grid steps so the "parallel"
    # axis can feed both v7x TensorCores.
    b_tile = _pick_b_tile(B, max_b_tile)
    grid = (B // b_tile,)

    # TODO(synk): for very large L*max(C_in,C_out) (v7x 64 MiB VMEM budget),
    # restructure as a two-phase L-tiled grid (stats accumulation pass, then
    # normalize+SiLU+conv with a 1-column halo). Not needed at these sizes.

    def const_spec(c):
        nd = c.ndim
        return pl.BlockSpec(c.shape, lambda b, _nd=nd: (0,) * _nd)

    in_specs = (
        [pl.BlockSpec((b_tile, C_in, L), lambda b: (b, 0, 0)),    # x (NCL)
         pl.BlockSpec((b_tile, C_out, 1), lambda b: (b, 0, 0))]   # fused bias1
        + [const_spec(c) for c in consts]
    )

    kernel = functools.partial(
        _residual_block_kernel, b_tile=b_tile, has_skip=has_skip,
        mxu_dtype=mxu_dtype, act_dtype=act_dtype)

    return pl.pallas_call(
        kernel,
        out_shape=jax.ShapeDtypeStruct((B, C_out, L), out_dtype),
        grid=grid,
        in_specs=in_specs,
        out_specs=pl.BlockSpec((b_tile, C_out, L), lambda b: (b, 0, 0)),
        compiler_params=pltpu.CompilerParams(
            dimension_semantics=("parallel",),   # shards across v7x's 2 TCs
            vmem_limit_bytes=vmem_limit_bytes),
    )(x, bias1, *consts)


# ---------------- pure-JAX reference (PyTorch semantics) ----------------
def reference_forward(x, time_emb, cond_emb, params, groups=8):
    def group_norm(h, G, gamma, beta):
        B, C, L = h.shape
        hr = h.reshape(B, G, (C // G) * L)
        m = hr.mean(-1, keepdims=True)
        v = ((hr - m) ** 2).mean(-1, keepdims=True)
        hn = ((hr - m) / jnp.sqrt(v + EPS)).reshape(B, C, L)
        return hn * gamma[None, :, None] + beta[None, :, None]

    def conv1d(h, w, b, pad):
        out = jax.lax.conv_general_dilated(
            h, w, window_strides=(1,), padding=[(pad, pad)],
            dimension_numbers=("NCH", "OIH", "NCH"), precision=_HI)
        return out + b[None, :, None]

    silu = jax.nn.silu
    C_in = x.shape[1]
    C_out = params["conv1_w"].shape[0]
    g_in = _group_count(groups, C_in)
    g_out = _group_count(groups, C_out)

    if C_in != C_out:
        residual = conv1d(x, params["skip_w"], params["skip_b"], 0)
    else:
        residual = x
    h = group_norm(x, g_in, params["norm1_g"], params["norm1_b"])
    h = silu(h)
    h = conv1d(h, params["conv1_w"], params["conv1_b"], 1)
    tb = (jnp.dot(silu(time_emb), params["time_w"].T, precision=_HI)
          + params["time_b"])[:, :, None]
    cb = (jnp.dot(silu(cond_emb), params["cond_w"].T, precision=_HI)
          + params["cond_b"])[:, :, None]
    h = h + tb + cb
    h = group_norm(h, g_out, params["norm2_g"], params["norm2_b"])
    h = silu(h)
    h = conv1d(h, params["conv2_w"], params["conv2_b"], 1)
    return h + residual


if __name__ == "__main__":
    B, L = 2, 16
    T_DIM, D_DIM = 32, 16

    def make_inputs(key, C_in, C_out):
        keys = jax.random.split(key, 17)

        def rnd(k, shape, scale=0.2):
            return scale * jax.random.normal(k, shape, dtype=jnp.float32)

        params = {
            "norm1_g": 1.0 + rnd(keys[0], (C_in,)),
            "norm1_b": rnd(keys[1], (C_in,)),
            "conv1_w": rnd(keys[2], (C_out, C_in, 3)),
            "conv1_b": rnd(keys[3], (C_out,)),
            "norm2_g": 1.0 + rnd(keys[4], (C_out,)),
            "norm2_b": rnd(keys[5], (C_out,)),
            "conv2_w": rnd(keys[6], (C_out, C_out, 3)),
            "conv2_b": rnd(keys[7], (C_out,)),
            "time_w": rnd(keys[8], (C_out, T_DIM)),
            "time_b": rnd(keys[9], (C_out,)),
            "cond_w": rnd(keys[10], (C_out, D_DIM)),
            "cond_b": rnd(keys[11], (C_out,)),
        }
        if C_in != C_out:
            params["skip_w"] = rnd(keys[12], (C_out, C_in, 1))
            params["skip_b"] = rnd(keys[13], (C_out,))
        x = jax.random.normal(keys[14], (B, C_in, L), dtype=jnp.float32)
        time_emb = jax.random.normal(keys[15], (B, T_DIM), dtype=jnp.float32)
        cond_emb = jax.random.normal(keys[16], (B, D_DIM), dtype=jnp.float32)
        return x, time_emb, cond_emb, params

    root = jax.random.PRNGKey(0)
    k_a, k_b = jax.random.split(root)

    # Case 1: C_in != C_out (1x1-conv skip path), f32 MXU operands (tight check).
    x, te, ce, p = make_inputs(k_a, 4, 8)
    ref = reference_forward(x, te, ce, p)
    out_f32 = jax.block_until_ready(
        residual_block_1d(x, te, ce, p, mxu_dtype=jnp.float32))
    assert out_f32.shape == (B, 8, L)
    np.testing.assert_allclose(np.asarray(out_f32), np.asarray(ref),
                               rtol=1.5e-3, atol=1.5e-3)

    # Case 1b: same block with the default bf16 MXU operands (stats/SiLU f32).
    out_bf16 = jax.block_until_ready(residual_block_1d(x, te, ce, p))
    np.testing.assert_allclose(np.asarray(out_bf16), np.asarray(ref),
                               rtol=5e-2, atol=5e-2)

    # Case 2: C_in == C_out (nn.Identity skip -> no skip matmul in the kernel).
    x2, te2, ce2, p2 = make_inputs(k_b, 8, 8)
    ref2 = reference_forward(x2, te2, ce2, p2)
    out2 = jax.block_until_ready(residual_block_1d(x2, te2, ce2, p2))
    np.testing.assert_allclose(np.asarray(out2), np.asarray(ref2),
                               rtol=5e-2, atol=5e-2)

    print("KERNEL_OK")
</pallas_src>

<mosaic_0001>
module attributes {stable_mosaic.version = 11 : i64} {
  func.func @_residual_block_kernel(%arg0: i32, %arg1: memref<1x4x16xf32, #tpu.memory_space<vmem>>, %arg2: memref<1x8x1xf32, #tpu.memory_space<vmem>>, %arg3: memref<4x1xf32, #tpu.memory_space<vmem>>, %arg4: memref<4x1xf32, #tpu.memory_space<vmem>>, %arg5: memref<4x4xf32, #tpu.memory_space<vmem>>, %arg6: memref<8x12xf32, #tpu.memory_space<vmem>>, %arg7: memref<8x1xf32, #tpu.memory_space<vmem>>, %arg8: memref<8x1xf32, #tpu.memory_space<vmem>>, %arg9: memref<8x8xf32, #tpu.memory_space<vmem>>, %arg10: memref<8x24xf32, #tpu.memory_space<vmem>>, %arg11: memref<8x1xf32, #tpu.memory_space<vmem>>, %arg12: memref<8x4xf32, #tpu.memory_space<vmem>>, %arg13: memref<8x1xf32, #tpu.memory_space<vmem>>, %arg14: memref<1x8x16xf32, #tpu.memory_space<vmem>>) attributes {dimension_semantics = [#tpu.dimension_semantics<parallel>], iteration_bounds = array<i64: 2>, scalar_prefetch = 0 : i64, scratch_operands = 0 : i64, tpu.core_type = #tpu.core_type<tc>, window_params = [{transform_indices = @transform_0, window_bounds = array<i64: 1, 4, 16>}, {transform_indices = @transform_1, window_bounds = array<i64: 1, 8, 1>}, {pipeline_mode = #tpu.pipeline_mode<synchronous>, transform_indices = @transform_2, window_bounds = array<i64: 4, 1>}, {pipeline_mode = #tpu.pipeline_mode<synchronous>, transform_indices = @transform_3, window_bounds = array<i64: 4, 1>}, {pipeline_mode = #tpu.pipeline_mode<synchronous>, transform_indices = @transform_4, window_bounds = array<i64: 4, 4>}, {pipeline_mode = #tpu.pipeline_mode<synchronous>, transform_indices = @transform_5, window_bounds = array<i64: 8, 12>}, {pipeline_mode = #tpu.pipeline_mode<synchronous>, transform_indices = @transform_6, window_bounds = array<i64: 8, 1>}, {pipeline_mode = #tpu.pipeline_mode<synchronous>, transform_indices = @transform_7, window_bounds = array<i64: 8, 1>}, {pipeline_mode = #tpu.pipeline_mode<synchronous>, transform_indices = @transform_8, window_bounds = array<i64: 8, 8>}, {pipeline_mode = #tpu.pipeline_mode<synchronous>, transform_indices = @transform_9, window_bounds = array<i64: 8, 24>}, {pipeline_mode = #tpu.pipeline_mode<synchronous>, transform_indices = @transform_10, window_bounds = array<i64: 8, 1>}, {pipeline_mode = #tpu.pipeline_mode<synchronous>, transform_indices = @transform_11, window_bounds = array<i64: 8, 4>}, {pipeline_mode = #tpu.pipeline_mode<synchronous>, transform_indices = @transform_12, window_bounds = array<i64: 8, 1>}, {transform_indices = @transform_13, window_bounds = array<i64: 1, 8, 16>}]} {
    %0 = tpu.iota {dimensions = array<i32: 1>} : vector<1x16xi32>
    %c0_i32 = arith.constant 0 : i32
    %1 = vector.broadcast %c0_i32 : i32 to vector<1x16xi32>
    %2 = arith.cmpi ne, %0, %1 : vector<1x16xi32>
    %c15_i32 = arith.constant 15 : i32
    %3 = vector.broadcast %c15_i32 : i32 to vector<1x16xi32>
    %4 = arith.cmpi ne, %0, %3 : vector<1x16xi32>
    %c0 = arith.constant 0 : index
    %c0_0 = arith.constant 0 : index
    %c0_1 = arith.constant 0 : index
    %5 = vector.load %arg1[%c0, %c0_0, %c0_1] : memref<1x4x16xf32, #tpu.memory_space<vmem>>, vector<1x4x16xf32>
    %6 = vector.shape_cast %5 : vector<1x4x16xf32> to vector<4x16xf32>
    %cst = arith.constant dense<0.000000e+00> : vector<4xf32>
    %7 = vector.multi_reduction <add>, %6, %cst [1] : vector<4x16xf32> to vector<4xf32>
    %8 = vector.shape_cast %7 : vector<4xf32> to vector<4x1xf32>
    %c0_2 = arith.constant 0 : index
    %c0_3 = arith.constant 0 : index
    %9 = vector.load %arg5[%c0_2, %c0_3] : memref<4x4xf32, #tpu.memory_space<vmem>>, vector<4x4xf32>
    %cst_4 = arith.constant dense<0.000000e+00> : vector<4x1xf32>
    %10 = tpu.matmul %9, %8, %cst_4 {dimension_numbers = #tpu.dot_dimension_numbers<[1], [0], [0], [1], [0, 0, 1, 1], [], []>} : vector<4x4xf32>, vector<4x1xf32>, vector<4x1xf32> -> vector<4x1xf32>
    %11 = vector.broadcast %10 : vector<4x1xf32> to vector<4x16xf32>
    %12 = arith.subf %6, %11 : vector<4x16xf32>
    %13 = arith.mulf %12, %12 : vector<4x16xf32>
    %cst_5 = arith.constant dense<0.000000e+00> : vector<4xf32>
    %14 = vector.multi_reduction <add>, %13, %cst_5 [1] : vector<4x16xf32> to vector<4xf32>
    %15 = vector.shape_cast %14 : vector<4xf32> to vector<4x1xf32>
    %c0_6 = arith.constant 0 : index
    %c0_7 = arith.constant 0 : index
    %16 = vector.load %arg5[%c0_6, %c0_7] : memref<4x4xf32, #tpu.memory_space<vmem>>, vector<4x4xf32>
    %cst_8 = arith.constant dense<0.000000e+00> : vector<4x1xf32>
    %17 = tpu.matmul %16, %15, %cst_8 {dimension_numbers = #tpu.dot_dimension_numbers<[1], [0], [0], [1], [0, 0, 1, 1], [], []>} : vector<4x4xf32>, vector<4x1xf32>, vector<4x1xf32> -> vector<4x1xf32>
    %cst_9 = arith.constant 9.99999974E-6 : f32
    %18 = vector.broadcast %cst_9 : f32 to vector<4x1xf32>
    %19 = arith.addf %17, %18 : vector<4x1xf32>
    %20 = math.rsqrt %19 : vector<4x1xf32>
    %21 = vector.broadcast %20 : vector<4x1xf32> to vector<4x16xf32>
    %22 = arith.mulf %12, %21 : vector<4x16xf32>
    %c0_10 = arith.constant 0 : index
    %c0_11 = arith.constant 0 : index
    %23 = vector.load %arg3[%c0_10, %c0_11] : memref<4x1xf32, #tpu.memory_space<vmem>>, vector<4x1xf32>
    %24 = vector.broadcast %23 : vector<4x1xf32> to vector<4x16xf32>
    %25 = arith.mulf %22, %24 : vector<4x16xf32>
    %c0_12 = arith.constant 0 : index
    %c0_13 = arith.constant 0 : index
    %26 = vector.load %arg4[%c0_12, %c0_13] : memref<4x1xf32, #tpu.memory_space<vmem>>, vector<4x1xf32>
    %27 = vector.broadcast %26 : vector<4x1xf32> to vector<4x16xf32>
    %28 = arith.addf %25, %27 : vector<4x16xf32>
    %29 = arith.negf %28 : vector<4x16xf32>
    %30 = math.exp %29 : vector<4x16xf32>
    %cst_14 = arith.constant 1.000000e+00 : f32
    %31 = vector.broadcast %cst_14 : f32 to vector<4x16xf32>
    %32 = arith.addf %31, %30 : vector<4x16xf32>
    %33 = arith.divf %31, %32 : vector<4x16xf32>
    %34 = arith.mulf %28, %33 : vector<4x16xf32>
    %c1_i32 = arith.constant 1 : i32
    %35 = tpu.dynamic_rotate %34 by %c1_i32 dim 1 : vector<4x16xf32>, i32 -> vector<4x16xf32>
    %cst_15 = arith.constant 0.000000e+00 : f32
    %36 = vector.shape_cast %2 : vector<1x16xi1> to vector<1x16xi1>
    %37 = vector.broadcast %36 : vector<1x16xi1> to vector<4x16xi1>
    %38 = vector.broadcast %cst_15 : f32 to vector<4x16xf32>
    %39 = arith.select %37, %35, %38 : vector<4x16xi1>, vector<4x16xf32>
    %c15_i32_16 = arith.constant 15 : i32
    %40 = tpu.dynamic_rotate %34 by %c15_i32_16 dim 1 : vector<4x16xf32>, i32 -> vector<4x16xf32>
    %cst_17 = arith.constant 0.000000e+00 : f32
    %41 = vector.shape_cast %4 : vector<1x16xi1> to vector<1x16xi1>
    %42 = vector.broadcast %41 : vector<1x16xi1> to vector<4x16xi1>
    %43 = vector.broadcast %cst_17 : f32 to vector<4x16xf32>
    %44 = arith.select %42, %40, %43 : vector<4x16xi1>, vector<4x16xf32>
    %45 = tpu.concatenate %39, %34, %44 in 0 : vector<4x16xf32>, vector<4x16xf32>, vector<4x16xf32> -> vector<12x16xf32>
    %c0_18 = arith.constant 0 : index
    %c0_19 = arith.constant 0 : index
    %46 = vector.load %arg6[%c0_18, %c0_19] : memref<8x12xf32, #tpu.memory_space<vmem>>, vector<8x12xf32>
    %cst_20 = arith.constant dense<0.000000e+00> : vector<8x16xf32>
    %47 = tpu.matmul %46, %45, %cst_20 {dimension_numbers = #tpu.dot_dimension_numbers<[1], [0], [0], [1], [0, 0, 1, 1], [], []>} : vector<8x12xf32>, vector<12x16xf32>, vector<8x16xf32> -> vector<8x16xf32>
    %c0_21 = arith.constant 0 : index
    %c0_22 = arith.constant 0 : index
    %c0_23 = arith.constant 0 : index
    %48 = vector.load %arg2[%c0_21, %c0_22, %c0_23] : memref<1x8x1xf32, #tpu.memory_space<vmem>>, vector<1x8x1xf32>
    %49 = vector.shape_cast %48 : vector<1x8x1xf32> to vector<8x1xf32>
    %50 = vector.broadcast %49 : vector<8x1xf32> to vector<8x16xf32>
    %51 = arith.addf %47, %50 : vector<8x16xf32>
    %cst_24 = arith.constant dense<0.000000e+00> : vector<8xf32>
    %52 = vector.multi_reduction <add>, %51, %cst_24 [1] : vector<8x16xf32> to vector<8xf32>
    %53 = vector.shape_cast %52 : vector<8xf32> to vector<8x1xf32>
    %c0_25 = arith.constant 0 : index
    %c0_26 = arith.constant 0 : index
    %54 = vector.load %arg9[%c0_25, %c0_26] : memref<8x8xf32, #tpu.memory_space<vmem>>, vector<8x8xf32>
    %cst_27 = arith.constant dense<0.000000e+00> : vector<8x1xf32>
    %55 = tpu.matmul %54, %53, %cst_27 {dimension_numbers = #tpu.dot_dimension_numbers<[1], [0], [0], [1], [0, 0, 1, 1], [], []>} : vector<8x8xf32>, vector<8x1xf32>, vector<8x1xf32> -> vector<8x1xf32>
    %56 = vector.broadcast %55 : vector<8x1xf32> to vector<8x16xf32>
    %57 = arith.subf %51, %56 : vector<8x16xf32>
    %58 = arith.mulf %57, %57 : vector<8x16xf32>
    %cst_28 = arith.constant dense<0.000000e+00> : vector<8xf32>
    %59 = vector.multi_reduction <add>, %58, %cst_28 [1] : vector<8x16xf32> to vector<8xf32>
    %60 = vector.shape_cast %59 : vector<8xf32> to vector<8x1xf32>
    %c0_29 = arith.constant 0 : index
    %c0_30 = arith.constant 0 : index
    %61 = vector.load %arg9[%c0_29, %c0_30] : memref<8x8xf32, #tpu.memory_space<vmem>>, vector<8x8xf32>
    %cst_31 = arith.constant dense<0.000000e+00> : vector<8x1xf32>
    %62 = tpu.matmul %61, %60, %cst_31 {dimension_numbers = #tpu.dot_dimension_numbers<[1], [0], [0], [1], [0, 0, 1, 1], [], []>} : vector<8x8xf32>, vector<8x1xf32>, vector<8x1xf32> -> vector<8x1xf32>
    %cst_32 = arith.constant 9.99999974E-6 : f32
    %63 = vector.broadcast %cst_32 : f32 to vector<8x1xf32>
    %64 = arith.addf %62, %63 : vector<8x1xf32>
    %65 = math.rsqrt %64 : vector<8x1xf32>
    %66 = vector.broadcast %65 : vector<8x1xf32> to vector<8x16xf32>
    %67 = arith.mulf %57, %66 : vector<8x16xf32>
    %c0_33 = arith.constant 0 : index
    %c0_34 = arith.constant 0 : index
    %68 = vector.load %arg7[%c0_33, %c0_34] : memref<8x1xf32, #tpu.memory_space<vmem>>, vector<8x1xf32>
    %69 = vector.broadcast %68 : vector<8x1xf32> to vector<8x16xf32>
    %70 = arith.mulf %67, %69 : vector<8x16xf32>
    %c0_35 = arith.constant 0 : index
    %c0_36 = arith.constant 0 : index
    %71 = vector.load %arg8[%c0_35, %c0_36] : memref<8x1xf32, #tpu.memory_space<vmem>>, vector<8x1xf32>
    %72 = vector.broadcast %71 : vector<8x1xf32> to vector<8x16xf32>
    %73 = arith.addf %70, %72 : vector<8x16xf32>
    %74 = arith.negf %73 : vector<8x16xf32>
    %75 = math.exp %74 : vector<8x16xf32>
    %cst_37 = arith.constant 1.000000e+00 : f32
    %76 = vector.broadcast %cst_37 : f32 to vector<8x16xf32>
    %77 = arith.addf %76, %75 : vector<8x16xf32>
    %78 = arith.divf %76, %77 : vector<8x16xf32>
    %79 = arith.mulf %73, %78 : vector<8x16xf32>
    %c1_i32_38 = arith.constant 1 : i32
    %80 = tpu.dynamic_rotate %79 by %c1_i32_38 dim 1 : vector<8x16xf32>, i32 -> vector<8x16xf32>
    %cst_39 = arith.constant 0.000000e+00 : f32
    %81 = vector.shape_cast %2 : vector<1x16xi1> to vector<1x16xi1>
    %82 = vector.broadcast %81 : vector<1x16xi1> to vector<8x16xi1>
    %83 = vector.broadcast %cst_39 : f32 to vector<8x16xf32>
    %84 = arith.select %82, %80, %83 : vector<8x16xi1>, vector<8x16xf32>
    %c15_i32_40 = arith.constant 15 : i32
    %85 = tpu.dynamic_rotate %79 by %c15_i32_40 dim 1 : vector<8x16xf32>, i32 -> vector<8x16xf32>
    %cst_41 = arith.constant 0.000000e+00 : f32
    %86 = vector.shape_cast %4 : vector<1x16xi1> to vector<1x16xi1>
    %87 = vector.broadcast %86 : vector<1x16xi1> to vector<8x16xi1>
    %88 = vector.broadcast %cst_41 : f32 to vector<8x16xf32>
    %89 = arith.select %87, %85, %88 : vector<8x16xi1>, vector<8x16xf32>
    %90 = tpu.concatenate %84, %79, %89 in 0 : vector<8x16xf32>, vector<8x16xf32>, vector<8x16xf32> -> vector<24x16xf32>
    %c0_42 = arith.constant 0 : index
    %c0_43 = arith.constant 0 : index
    %91 = vector.load %arg10[%c0_42, %c0_43] : memref<8x24xf32, #tpu.memory_space<vmem>>, vector<8x24xf32>
    %cst_44 = arith.constant dense<0.000000e+00> : vector<8x16xf32>
    %92 = tpu.matmul %91, %90, %cst_44 {dimension_numbers = #tpu.dot_dimension_numbers<[1], [0], [0], [1], [0, 0, 1, 1], [], []>} : vector<8x24xf32>, vector<24x16xf32>, vector<8x16xf32> -> vector<8x16xf32>
    %c0_45 = arith.constant 0 : index
    %c0_46 = arith.constant 0 : index
    %93 = vector.load %arg11[%c0_45, %c0_46] : memref<8x1xf32, #tpu.memory_space<vmem>>, vector<8x1xf32>
    %94 = vector.broadcast %93 : vector<8x1xf32> to vector<8x16xf32>
    %95 = arith.addf %92, %94 : vector<8x16xf32>
    %c0_47 = arith.constant 0 : index
    %c0_48 = arith.constant 0 : index
    %96 = vector.load %arg12[%c0_47, %c0_48] : memref<8x4xf32, #tpu.memory_space<vmem>>, vector<8x4xf32>
    %cst_49 = arith.constant dense<0.000000e+00> : vector<8x16xf32>
    %97 = tpu.matmul %96, %6, %cst_49 {dimension_numbers = #tpu.dot_dimension_numbers<[1], [0], [0], [1], [0, 0, 1, 1], [], []>} : vector<8x4xf32>, vector<4x16xf32>, vector<8x16xf32> -> vector<8x16xf32>
    %c0_50 = arith.constant 0 : index
    %c0_51 = arith.constant 0 : index
    %98 = vector.load %arg13[%c0_50, %c0_51] : memref<8x1xf32, #tpu.memory_space<vmem>>, vector<8x1xf32>
    %99 = vector.broadcast %98 : vector<8x1xf32> to vector<8x16xf32>
    %100 = arith.addf %97, %99 : vector<8x16xf32>
    %101 = arith.addf %95, %100 : vector<8x16xf32>
    %c0_52 = arith.constant 0 : index
    %c0_53 = arith.constant 0 : index
    %c0_54 = arith.constant 0 : index
    %102 = vector.load %arg14[%c0_52, %c0_53, %c0_54] : memref<1x8x16xf32, #tpu.memory_space<vmem>>, vector<1x8x16xf32>
    %103 = vector.shape_cast %102 : vector<1x8x16xf32> to vector<8x16xf32>
    %104 = vector.shape_cast %101 : vector<8x16xf32> to vector<1x8x16xf32>
    tpu.vector_store %arg14[%c0_52, %c0_53, %c0_54], %104 {strides = array<i32>} : memref<1x8x16xf32, #tpu.memory_space<vmem>>, vector<1x8x16xf32>,
    return
  }
  func.func @transform_0(%arg0: i32) -> (i32, i32, i32) {
    %c0_i32 = arith.constant 0 : i32
    %c0_i32_0 = arith.constant 0 : i32
    %c0_i32_1 = arith.constant 0 : i32
    return %arg0, %c0_i32, %c0_i32_0 : i32, i32, i32
  }
  func.func @transform_1(%arg0: i32) -> (i32, i32, i32) {
    %c0_i32 = arith.constant 0 : i32
    %c0_i32_0 = arith.constant 0 : i32
    %c0_i32_1 = arith.constant 0 : i32
    return %arg0, %c0_i32, %c0_i32_0 : i32, i32, i32
  }
  func.func @transform_2(%arg0: i32) -> (i32, i32) {
    %c0_i32 = arith.constant 0 : i32
    %c0_i32_0 = arith.constant 0 : i32
    %c0_i32_1 = arith.constant 0 : i32
    return %c0_i32, %c0_i32_0 : i32, i32
  }
  func.func @transform_3(%arg0: i32) -> (i32, i32) {
    %c0_i32 = arith.constant 0 : i32
    %c0_i32_0 = arith.constant 0 : i32
    %c0_i32_1 = arith.constant 0 : i32
    return %c0_i32, %c0_i32_0 : i32, i32
  }
  func.func @transform_4(%arg0: i32) -> (i32, i32) {
    %c0_i32 = arith.constant 0 : i32
    %c0_i32_0 = arith.constant 0 : i32
    %c0_i32_1 = arith.constant 0 : i32
    return %c0_i32, %c0_i32_0 : i32, i32
  }
  func.func @transform_5(%arg0: i32) -> (i32, i32) {
    %c0_i32 = arith.constant 0 : i32
    %c0_i32_0 = arith.constant 0 : i32
    %c0_i32_1 = arith.constant 0 : i32
    return %c0_i32, %c0_i32_0 : i32, i32
  }
  func.func @transform_6(%arg0: i32) -> (i32, i32) {
    %c0_i32 = arith.constant 0 : i32
    %c0_i32_0 = arith.constant 0 : i32
    %c0_i32_1 = arith.constant 0 : i32
    return %c0_i32, %c0_i32_0 : i32, i32
  }
  func.func @transform_7(%arg0: i32) -> (i32, i32) {
    %c0_i32 = arith.constant 0 : i32
    %c0_i32_0 = arith.constant 0 : i32
    %c0_i32_1 = arith.constant 0 : i32
    return %c0_i32, %c0_i32_0 : i32, i32
  }
  func.func @transform_8(%arg0: i32) -> (i32, i32) {
    %c0_i32 = arith.constant 0 : i32
    %c0_i32_0 = arith.constant 0 : i32
    %c0_i32_1 = arith.constant 0 : i32
    return %c0_i32, %c0_i32_0 : i32, i32
  }
  func.func @transform_9(%arg0: i32) -> (i32, i32) {
    %c0_i32 = arith.constant 0 : i32
    %c0_i32_0 = arith.constant 0 : i32
    %c0_i32_1 = arith.constant 0 : i32
    return %c0_i32, %c0_i32_0 : i32, i32
  }
  func.func @transform_10(%arg0: i32) -> (i32, i32) {
    %c0_i32 = arith.constant 0 : i32
    %c0_i32_0 = arith.constant 0 : i32
    %c0_i32_1 = arith.constant 0 : i32
    return %c0_i32, %c0_i32_0 : i32, i32
  }
  func.func @transform_11(%arg0: i32) -> (i32, i32) {
    %c0_i32 = arith.constant 0 : i32
    %c0_i32_0 = arith.constant 0 : i32
    %c0_i32_1 = arith.constant 0 : i32
    return %c0_i32, %c0_i32_0 : i32, i32
  }
  func.func @transform_12(%arg0: i32) -> (i32, i32) {
    %c0_i32 = arith.constant 0 : i32
    %c0_i32_0 = arith.constant 0 : i32
    %c0_i32_1 = arith.constant 0 : i32
    return %c0_i32, %c0_i32_0 : i32, i32
  }
  func.func @transform_13(%arg0: i32) -> (i32, i32, i32) {
    %c0_i32 = arith.constant 0 : i32
    %c0_i32_0 = arith.constant 0 : i32
    %c0_i32_1 = arith.constant 0 : i32
    return %arg0, %c0_i32, %c0_i32_0 : i32, i32, i32
  }
}

</mosaic_0001>

<bundles_post_ra>
// kernel: tpu_custom_call.1
= control target key start
LH: loop header
LB: loop body
LE: loop exit
PB: predicated region body
PF: predicated region fallthrough
CT: control target
= control target key end

     0   :  { %s1690_s0 = inlined_call_operand.vmem [shape: f32[2,4,16], index: 0, kind: input, shape index: {}]   ;;  %s1691_s1 = inlined_call_operand.vmem [shape: f32[2,8,1], index: 1, kind: input, shape index: {}]   ;;  %s1692_s2 = inlined_call_operand.vmem [shape: f32[4,1], index: 2, kind: input, shape index: {}]   ;;  %s1693_s3 = inlined_call_operand.vmem [shape: f32[4,1], index: 3, kind: input, shape index: {}]   ;;  %s1694_s4 = inlined_call_operand.vmem [shape: f32[4,4], index: 4, kind: input, shape index: {}]   ;;  %s1695_s5 = inlined_call_operand.vmem [shape: f32[8,12], index: 5, kind: input, shape index: {}]   ;;  %s1696_s6 = inlined_call_operand.vmem [shape: f32[8,1], index: 6, kind: input, shape index: {}]   ;;  %s1697_s7 = inlined_call_operand.vmem [shape: f32[8,1], index: 7, kind: input, shape index: {}]   ;;  %s1698_s8 = inlined_call_operand.vmem [shape: f32[8,8], index: 8, kind: input, shape index: {}]   ;;  %s1699_s9 = inlined_call_operand.vmem [shape: f32[8,24], index: 9, kind: input, shape index: {}]   ;;  %s1700_s10 = inlined_call_operand.vmem [shape: f32[8,1], index: 10, kind: input, shape index: {}]   ;;  %s1701_s11 = inlined_call_operand.vmem [shape: f32[8,4], index: 11, kind: input, shape index: {}]   ;;  %s1702_s12 = inlined_call_operand.vmem [shape: f32[8,1], index: 12, kind: input, shape index: {}]   ;;  %s1703_s13 = inlined_call_operand.hbm [shape: f32[2,8,16], index: 13, kind: output, shape index: {}]  }
   0x1   :  { %1704 = sst [smem:[#allocation5_spill]] %s1690_s0 }
   0x2   :  { %1705 = sst [smem:[#allocation6_spill]] %s1691_s1 }
   0x3   :  { %1706 = sst [smem:[#allocation7_spill]] %s1692_s2 }
   0x4   :  { %1707 = sst [smem:[#allocation8_spill]] %s1693_s3 }
   0x5   :  { %18 = vsyncpa [#allocation3], 0 }
   0x6   :  { %20 = vsyncpa [#allocation3 + $0x1], 0  ;;  %s1495_s25 = smov 0   ;;  %s1497_s26 = smov 0  }
   0x7   :  { %s1499_s27 = smov 0   ;;  %s1501_s28 = smov 0  }
   0x8 LB: > { %s1516_s29 = sadd.s32 4294967295, %s1416_s28   ;;  %s1213_s30 = sadd.s32 4294967294, %s1416_s28   ;;  %s1416_s28 = sphi %s1501_s28, %s1717_s28   ;;  %s1412_s27 = sphi %s1499_s27, %s1716_s27   ;;  %s1408_s26 = sphi %s1497_s26, %s1715_s26   ;;  %s1404_s25 = sphi %s1495_s25, %s1714_s25  }
   0x9   : > { %s1520_s14 = sadd.s32 1, %s1416_s28   ;;  %s316_s15 = sadd.s32 1, %s1412_s27 }
   0xa   : > { %s313_s16 = ssub.s32 %s1416_s28, %s1520_s14  ;;  %p326_p0 = scmp.ne.s32.totalorder %s1412_s27, %s1408_s26 }
   0xb   : > { %p314_p1 = scmp.eq.s32.totalorder %s313_s16, 0  ;;  %p327_p2 = scmp.eq.s32.totalorder %s1516_s29, 1 }
   0xc   : > { %p332_p3 = scmp.ne.s32.totalorder %s1408_s26, %s1404_s25  ;;  %p333_p4 = scmp.eq.s32.totalorder %s1213_s30, 1 }
   0xd   : > { %s1531_s17 = scalar_select %p314_p1, %s1412_s27, %s316_s15  }
   0xe   : > { %p1533_p5 = por %p327_p2, %p326_p0  ;;  %p1537_p6 = por %p333_p4, %p332_p3 }
   0xf   : > { %p1216_p7 = scmp.ge.s32.totalorder %s1416_s28, 1  ;;  %p398_p8 = scmp.lt.s32.totalorder %s1416_s28, 3 }
  0x11   : > { %p399_p9 = pnand %p1216_p7, %p398_p8 }
  0x12   : > { %p445_p10 = scmp.lt.s32.totalorder (!%p399_p9), %s1516_s29, 1  ;;  %s1710_s0 = sld [smem:[#allocation5_spill]] (!%p399_p9) }
  0x13   : > { %402 = sbr.rel (%p399_p9) target bundleno = 3088 (0xc10), region = 72  ;;  %s1711_s2 = sld [smem:[#allocation7_spill]] (!%p399_p9) }
  0x14   : > { %s1712_s3 = sld [smem:[#allocation8_spill]] (!%p399_p9)  ;;  %s1422_s15 = smov (!%p399_p9), 127  }
  0x15   : > { %s1713_s1 = sld [smem:[#allocation6_spill]] (!%p399_p9)  ;;  %s1423_s23 = smov (!%p399_p9), 113  }
  0x18   : > { %v1418_v0 = vmov 0.0   ;;  %s1547_s20 = scalar_select %p445_p10, %s1516_s29, 1  ;;  %vm458_vm0 = vcmask 125952   ;;  %vm1419_vm1 = vmmov 0   ;;  %v1420_v3 = vmov 0   ;;  %v676_v42 = vld [vmem:[%s1695_s5] sm:$0xff] }
  0x19   : > { %1256 = vmatprep.subr.mxu0 %v1418_v0  ;;  %1261 = vmatprep.subr.mxu1 %v1418_v0  ;;  %vm467_vm2 = vcmask 1043456   ;;  %v462_v4 = vld [vmem:[%s1694_s4] sm:$0xf]  ;;  %vm463_vm3 = vcmask 31744   ;;  %vm652_vm4 = vcmask 1047680   ;;  %v453_v35 = vlaneseq }
  0x1a   : > { %s1218_s21 = sshll.u32 %s1547_s20, 2  ;;  %1258 = vmatprep.mubr.msk.f32.mxu0 %vm1419_vm1, %v1418_v0  ;;  %1263 = vmatprep.mubr.msk.f32.mxu1 %vm1419_vm1, %v1418_v0  ;;  %v631_v13 = vld [vmem:[%s1711_s2] sm:$0xf]  ;;  %s1219_s30 = sshll.u32 %s1547_s20, 3  ;;  %vm683_vm7 = vcmask 97280   ;;  %vm760_vm8 = vcmask 130048  }
  0x1b   : > { %s448_s24 = scalar_lea.vmem %s1710_s0, %s1218_s21  ;;  %1342 = vset.pattern.permute.xlu0 %v1420_v3  ;;  %1343 = vset.pattern.permute.xlu1 %v1420_v3  ;;  %v638_v18 = vld [vmem:[%s1712_s3] sm:$0xf]  ;;  %s452_s22 = scalar_lea.vmem %s1713_s1, %s1219_s30  ;;  %v1592_v36 = vand.u32 127, %v453_v35  ;;  %vm765_vm9 = vcmask 64512   ;;  %vm969_vm10 = vcmask 195584  }
  0x1c   : > { %v1553_v1 = vld [vmem:[%s448_s24] sm:$0xf]  ;;  %s1421_s24 = smov 16   ;;  %s1236_s20 = sshll.u32 %s1516_s29, 7 }
  0x1d   : > { %v459_v2 = vsel %vm458_vm0, %v1553_v1, 0.0  ;;  %v677_v34 = vld [vmem:[%s452_s22] sm:$0xff]  ;;  %vm456_vm5 = vcmp.ne.s32.totalorder %v1592_v36, 15  ;;  %vm455_vm6 = vcmp.ne.s32.totalorder %v1592_v36, 0  ;;  %s1424_s29 = smov [#allocation2]  }
  0x1e   : > { %460 = vadd.xlane.f32.xlu0 %v459_v2  ;;  %v764_v49 = vld [vmem:[%s1698_s8] sm:$0xff] }
  0x1f   : > { %v926_v57 = vld [vmem:[%s1696_s6] sm:$0xff] }
  0x20   : > { %v933_v63 = vld [vmem:[%s1697_s7] sm:$0xff] }
  0xa7   : > { %v461_v5 = vpop.xlane.xlu0 %460 }
  0xa8   : > { %1257 = vmatpush3.msk.msra.mxu0 %vm467_vm2, %v461_v5 }
  0xa9   : > { %1259 = vmatmul.mubr.msk.f32.vlgmr.msra.gmra.mxu0 %vm463_vm3, %v462_v4  ;;  %1266 = vmatprep.subr.mxu0 %v1418_v0 }
  0xaa   : > { %1270 = vmatprep.mubr.msk.f32.mxu0 %vm1419_vm1, %v1418_v0 }
 0x169   : > { %v537_v6 = vpop.f32.mrf.mxu0 }
 0x16a   : > { %543 = vperm.xlu0 %1342, %v537_v6  }
 0x16b   : > { %v1260_v7 = vpop.f32.mrf.mxu0 }
 0x1e5   : > { %v544_v8 = vpop.permute.xlu0 %543 }
 0x1e6   : > { %v546_v9 = vsub.f32 %v1553_v1, %v544_v8 }
 0x1e8   : > { %v547_v10 = vmul.f32 %v546_v9, %v546_v9 }
 0x1ea   : > { %v548_v11 = vsel %vm458_vm0, %v547_v10, 0.0  ;;  %v1043_v10 = vld [vmem:[%s1701_s11] sm:$0xff] }
 0x1eb   : > { %549 = vadd.xlane.f32.xlu1 %v548_v11 }
 0x1fc   : > { %634 = vperm.xlu1 %1343, %v631_v13  }
 0x274   : > { %v550_v12 = vpop.xlane.xlu1 %549 }
 0x275   : > { %1262 = vmatpush3.msk.msra.mxu1 %vm467_vm2, %v550_v12 }
 0x276   : > { %1264 = vmatmul.mubr.msk.f32.vlgmr.msra.gmra.mxu1 %vm463_vm3, %v462_v4  ;;  %1273 = vmatprep.subr.mxu1 %v1418_v0 }
 0x277   : > { %1275 = vmatprep.mubr.msk.f32.mxu1 %vm1419_vm1, %v1418_v0 }
 0x278   : > { %v635_v19 = vpop.permute.xlu1 %634 }
 0x336   : > { %v620_v14 = vpop.f32.mrf.mxu1 }
 0x337   : > { %v621_v15 = vadd.f32 1e-05, %v620_v14 }
 0x338   : > { %v1265_v16 = vpop.f32.mrf.mxu1 }
 0x339   : > { %1344 = vrsqrt.f32 %v621_v15 }
 0x346   : > { %v1345_v17 = vpop.eup %1344 }
 0x347   : > { %627 = vperm.xlu1 %1343, %v1345_v17  }
 0x34b   : > { %641 = vperm.xlu1 %1343, %v638_v18   ;;  %v1044_v18 = vld [vmem:[%s1702_s12] sm:$0xff] }
 0x3c2   : > { %v628_v20 = vpop.permute.xlu1 %627 }
 0x3c3   : > { %v630_v21 = vmul.f32 %v628_v20, %v546_v9 }
 0x3c5   : > { %v637_v22 = vmul.f32 %v635_v19, %v630_v21  ;;  %v963_v19 = vld [vmem:[%s1700_s10] sm:$0xff] }
 0x3c6   : > { %v642_v23 = vpop.permute.xlu1 %641 }
 0x3c7   : > { %v644_v24 = vadd.f32 %v642_v23, %v637_v22  ;;  %v962_v22 = vld [vmem:[%s1699_s9] sm:$0xff] }
 0x3c9   : > { %v1224_v25 = vmul.f32 -1.442695, %v644_v24 }
 0x3cb   : > { %1346 = vpow2.f32 %v1224_v25 }
 0x3d8   : > { %v1347_v26 = vpop.eup %1346 }
 0x3d9   : > { %v648_v27 = vadd.f32 1.0, %v1347_v26 }
 0x3db   : > { %1348 = vrcp.f32 %v648_v27 }
 0x3e8   : > { %v1349_v28 = vpop.eup %1348 }
 0x3e9   : > { %v651_v29 = vmul.f32 %v1349_v28, %v644_v24 }
 0x3eb   : > { %653 = vrot.lane.b32.xlu1 %v651_v29, %s1421_s24  ;;  %v673_v40 = vrot.slane %v651_v29, 4 }
 0x45d   : > { %v654_v30 = vpop.permute.xlu1 %653 }
 0x45e   : > { %v655_v31 = vsel %vm652_vm4, %v654_v30, %v651_v29 }
 0x45f   : > { %656 = vrot.lane.b32.xlu1 %v655_v31, %s1421_s24 }
 0x4d1   : > { %v657_v32 = vpop.permute.xlu1 %656 }
 0x4d2   : > { %v658_v33 = vsel %vm652_vm4, %v657_v32, %v651_v29 }
 0x4d3   : > { %668 = vrot.lane.b32.xlu1 %v658_v33, %s1422_s15 }
 0x4d7   : > { %662 = vrot.lane.b32.xlu1 %v658_v33, %s1423_s23 }
 0x4db   : > { %680 = vperm.xlu1 %1343, %v677_v34  }
 0x545   : > { %v669_v37 = vpop.permute.xlu1 %668 }
 0x546   : > { %v671_v38 = vsel %vm456_vm5, %v669_v37, 0.0 }
 0x547   : > { %1267 = vmatpush3.msk.msra.mxu0 %vm467_vm2, %v671_v38 }
 0x548   : > { %1268 = vmatprep.subr.mxu0 %v1418_v0 }
 0x549   : > { %v663_v39 = vpop.permute.xlu1 %662 }
 0x54a   : > { %v665_v41 = vsel %vm455_vm6, %v663_v39, 0.0 }
 0x54b   : > { %v675_v43 = vsel %vm467_vm2, %v665_v41, %v673_v40 }
 0x54c   : > { %1269 = vmatpush3.msra.mxu0 %v675_v43 }
 0x54d   : > { %1271 = vmatmul.mubr.msk.f32.vlgmr.msra.gmra.mxu0 %vm683_vm7, %v676_v42  ;;  %1278 = vmatprep.subr.mxu0 %v1418_v0 }
 0x54e   : > { %1280 = vmatprep.mubr.msk.f32.mxu0 %vm1419_vm1, %v1418_v0 }
 0x556   : > { %v681_v44 = vpop.permute.xlu1 %680 }
 0x60d   : > { %v756_v45 = vpop.f32.mrf.mxu0 }
 0x60e   : > { %v757_v46 = vadd.f32 %v756_v45, %v681_v44 }
 0x60f   : > { %v1272_v47 = vpop.f32.mrf.mxu0 }
 0x610   : > { %v761_v48 = vsel %vm760_vm8, %v757_v46, 0.0 }
 0x611   : > { %762 = vadd.xlane.f32.xlu0 %v761_v48 }
 0x69a   : > { %v763_v50 = vpop.xlane.xlu0 %762 }
 0x69b   : > { %1274 = vmatpush3.msra.mxu1 %v763_v50 }
 0x69c   : > { %1276 = vmatmul.mubr.msk.f32.vlgmr.msra.gmra.mxu1 %vm765_vm9, %v764_v49  ;;  %1283 = vmatprep.subr.mxu1 %v1418_v0 }
 0x69d   : > { %1289 = vmatprep.mubr.msk.f32.mxu1 %vm1419_vm1, %v1418_v0 }
 0x75c   : > { %v835_v51 = vpop.f32.mrf.mxu1 }
 0x75d   : > { %841 = vperm.xlu1 %1343, %v835_v51  }
 0x75e   : > { %v1277_v52 = vpop.f32.mrf.mxu1 }
 0x7d8   : > { %v842_v53 = vpop.permute.xlu1 %841 }
 0x7d9   : > { %v844_v54 = vsub.f32 %v757_v46, %v842_v53 }
 0x7db   : > { %v845_v55 = vmul.f32 %v844_v54, %v844_v54 }
 0x7dd   : > { %v846_v56 = vsel %vm760_vm8, %v845_v55, 0.0 }
 0x7de   : > { %847 = vadd.xlane.f32.xlu1 %v846_v56 }
 0x7ef   : > { %929 = vperm.xlu1 %1343, %v926_v57  }
 0x867   : > { %v848_v58 = vpop.xlane.xlu1 %847 }
 0x868   : > { %1279 = vmatpush3.msra.mxu0 %v848_v58 }
 0x869   : > { %1281 = vmatmul.mubr.msk.f32.vlgmr.msra.gmra.mxu0 %vm765_vm9, %v764_v49  ;;  %1292 = vmatprep.subr.mxu0 %v1418_v0 }
 0x86a   : > { %1293 = vmatpush3.msk.msra.mxu0 %vm467_vm2, %v1553_v1  ;;  %1294 = vmatprep.mubr.msk.f32.mxu0 %vm1419_vm1, %v1418_v0 }
 0x86b   : > { %v930_v4 = vpop.permute.xlu1 %929 }
 0x86d   : > { %1295 = vmatmul.mubr.msk.f32.vlgmr.msra.gmra.mxu0 %vm463_vm3, %v1043_v10 }
 0x929   : > { %v915_v59 = vpop.f32.mrf.mxu0 }
 0x92a   : > { %v916_v60 = vadd.f32 1e-05, %v915_v59 }
 0x92b   : > { %v1282_v61 = vpop.f32.mrf.mxu0 }
 0x92c   : > { %1350 = vrsqrt.f32 %v916_v60 }
 0x92d   : > { %v1122_v17 = vpop.f32.mrf.mxu0 }
 0x92f   : > { %v1296_v20 = vpop.f32.mrf.mxu0 }
 0x939   : > { %v1351_v62 = vpop.eup %1350 }
 0x93a   : > { %922 = vperm.xlu0 %1342, %v1351_v62  }
 0x93e   : > { %936 = vperm.xlu0 %1342, %v933_v63  }
 0x9b5   : > { %v923_v2 = vpop.permute.xlu0 %922 }
 0x9b6   : > { %v925_v3 = vmul.f32 %v923_v2, %v844_v54 }
 0x9b8   : > { %v932_v5 = vmul.f32 %v930_v4, %v925_v3 }
 0x9b9   : > { %v937_v6 = vpop.permute.xlu0 %936 }
 0x9ba   : > { %v939_v1 = vadd.f32 %v937_v6, %v932_v5 }
 0x9bc   : > { %v1229_v7 = vmul.f32 -1.442695, %v939_v1 }
 0x9be   : > { %1352 = vpow2.f32 %v1229_v7 }
 0x9cb   : > { %v1353_v8 = vpop.eup %1352 }
 0x9cc   : > { %v943_v9 = vadd.f32 1.0, %v1353_v8 }
 0x9ce   : > { %1354 = vrcp.f32 %v943_v9 }
 0x9db   : > { %v1355_v11 = vpop.eup %1354 }
 0x9dc   : > { %v946_v12 = vmul.f32 %v1355_v11, %v939_v1 }
 0x9de   : > { %947 = vrot.lane.b32.xlu0 %v946_v12, %s1421_s24 }
 0xa50   : > { %v948_v13 = vpop.permute.xlu0 %947 }
 0xa51   : > { %v949_v14 = vsel %vm652_vm4, %v948_v13, %v946_v12 }
 0xa52   : > { %950 = vrot.lane.b32.xlu1 %v949_v14, %s1421_s24 }
 0xac4   : > { %v951_v15 = vpop.permute.xlu1 %950 }
 0xac5   : > { %v952_v16 = vsel %vm652_vm4, %v951_v15, %v946_v12 }
 0xac6   : > { %954 = vrot.lane.b32.xlu1 %v952_v16, %s1423_s23  ;;  %958 = vrot.lane.b32.xlu0 %v952_v16, %s1422_s15  ;;  %s442_s23 = sand.u32 1, %s1408_s26   ;;  %s1140_s15 = scalar_lea.hbm %s1703_s13, %s1236_s20 }
 0xac7   : > { %s1217_s22 = sshll.u32 %s442_s23, 3  ;;  %s1129_s0 = scalar_lea.sflag [#allocation3], %s442_s23 }
 0xac8   : > { %s444_s30 = scalar_lea.vmem [#allocation2], %s1217_s22  ;;  %s1360_s22 = sshll.u32 %s1424_s29, 4  ;;  %s1361_s22 = int_to_ptr.vmem [resolvable:$false] %s1360_s22 }
 0xac9   : > { %s1142_s16 = sshll.u32 %s444_s30, 4  ;;  %s1362_s2 = scalar_lea.vmem %s1361_s22, 256  ;;  %s1143_s16 = int_to_ptr.vmem [resolvable:$true] %s1142_s16 }
 0xaca   : > { %1047 = vperm.xlu1 %1343, %v1044_v18   ;;  %966 = vperm.xlu0 %1342, %v963_v19   ;;  %s1356_s1 = scalar_lea.vmem %s1143_s16, 128  ;;  %p1363_p0 = scmp.lt.s32.totalorder %s1143_s16, %s1361_s22 }
 0xacb   : > { %p1357_p11 = scmp.ne.s32.totalorder %s1143_s16, %s1356_s1  ;;  %p1364_p1 = scmp.lt.s32.totalorder %s1362_s2, %s1356_s1 }
 0xacd   : > { %p1358_p12 = pnand %p1357_p11, %p1533_p5  ;;  %p1365_p2 = por %p1364_p1, %p1363_p0 }
 0xacf   : > { %p1359_p13 = pneg %p1358_p12 }
 0xad1   : > { %p1366_p3 = pnand %p1365_p2, %p1359_p13 }
 0xb38   : > { %v959_v21 = vpop.permute.xlu0 %958  ;;  %v955_v23 = vpop.permute.xlu1 %954 }
 0xb39   : > { %1284 = vmatpush3.msk.msra.mxu1 %vm456_vm5, %v959_v21 }
 0xb3a   : > { %1285 = vmatprep.subr.mxu1 %v1418_v0 }
 0xb3b   : > { %1286 = vmatpush3.msra.mxu1 %v946_v12 }
 0xb3c   : > { %1287 = vmatprep.subr.mxu1 %v1418_v0 }
 0xb3d   : > { %1288 = vmatpush3.msk.msra.mxu1 %vm455_vm6, %v955_v23 }
 0xb3e   : > { %1290 = vmatmul.mubr.msk.f32.vlgmr.msra.gmra.mxu1 %vm969_vm10, %v962_v22 }
 0xb45   : > { %v1048_v24 = vpop.permute.xlu1 %1047  ;;  %v967_v25 = vpop.permute.xlu0 %966 }
 0xb46   : > { %v1123_v27 = vadd.f32 %v1122_v17, %v1048_v24 }
 0xbfe   : > { %v1039_v26 = vpop.f32.mrf.mxu1 }
 0xbff   : > { %v1040_v28 = vadd.f32 %v1039_v26, %v967_v25 }
 0xc00   : > { %v1291_v29 = vpop.f32.mrf.mxu1 }
 0xc01   : > { %v1126_v30 = vadd.f32 %v1123_v27, %v1040_v28 }
 0xc03   : > { %1127 = vst.msk [vmem:[%s444_s30] sm:$0xff] %vm760_vm8, %v1126_v30 }
 0xc04   : > { %1369 = shalt.err (!%p1366_p3)
}
 0xc05   : > { %s1370_s21 = scalar_lea.hbm %s1140_s15, 128  ;;  %s1374_s30 = scalar_lea.hbm %s1703_s13, 256 }
 0xc06   : > { %p1371_p4 = scmp.ne.s32.totalorder %s1140_s15, %s1370_s21  ;;  %p1375_p9 = scmp.lt.s32.totalorder %s1140_s15, %s1703_s13 }
 0xc07   : > { %p1376_p10 = scmp.lt.s32.totalorder %s1374_s30, %s1370_s21 }
 0xc08   : > { %p1372_p7 = pnand %p1371_p4, %p1533_p5 }
 0xc09   : > { %p1377_p11 = por %p1376_p10, %p1375_p9 }
 0xc0a   : > { %p1373_p8 = pneg %p1372_p7 }
 0xc0c   : > { %p1378_p12 = pnand %p1377_p11, %p1373_p8 }
 0xc0e   : > { %1381 = shalt.err (!%p1378_p12)
}
 0xc0f   : > { %1297 = dma.vmem_to_hbm [thread:$0]  (%p1533_p5), %s1143_s16, 128, %s1140_s15, %s1129_s0  }
 0xc10 PF: > { %p1303_p13 = scmp.ge.s32.totalorder %s1416_s28, 2  ;;  %s1154_s1 = sand.u32 1, %s1404_s25  }
 0xc11   : > { %s1155_s2 = scalar_lea.sflag [#allocation3], %s1154_s1 }
 0xc12   : > { %p1300_p0 = pnand %p1303_p13, %p1537_p6 }
 0xc14   : > { %p1301_p1 = pneg %p1300_p0 }
 0xc16   : > { %1399 = dma.done.wait (%p1301_p1), %s1155_s2, 128  }
 0xc17   : > { %1401 = vsyncadd (%p1301_p1), %s1155_s2, 4294967168  ;;  %p23_p2 = scmp.ge.s32.totalorder %s1520_s14, 4   ;;  %s1714_s25 = smov %s1408_s26 }
 0xc18   : > { %s1715_s26 = smov %s1412_s27  ;;  %s1716_s27 = smov %s1531_s17 }
 0xc19   : > { %s1717_s28 = smov %s1520_s14  ;;  %25 = sbr.rel (!%p23_p2) target bundleno = 8 (0x8), region = 110 }
 0xc1e   :  { %1160 = vsyncpa [#allocation3], 1 }
 0xc1f   :  { %1162 = vsyncpa [#allocation3 + $0x1], 1 }

</bundles_post_ra>
